<compile_context>
chip_gen: v6e
topology: v6e:2x2x1
jax: 0.10.0
libtpu: 0.0.40
codegen_flags: <defaults>
</compile_context>

<pallas_src>
import functools

import jax
import jax.numpy as jnp
from jax import lax
from jax.experimental import pallas as pl
from jax.experimental.pallas import tpu as pltpu


# --------------------------------------------------------------------------- #
# Helpers
# --------------------------------------------------------------------------- #
def _round_up(v, m):
    return -(-v // m) * m


def _static_int_p(p, max_int=8):
    """Return p as a small Python int if it is compile-time known and integral
    (GeM default p=3), else None -> general exp/log path."""
    try:
        pv = float(jnp.asarray(p).reshape(-1)[0])
    except Exception:  # traced under jit -> cannot specialize statically
        return None
    pv = max(pv, 0.1)  # matches clamp(p, min=0.1) in forward()
    r = int(round(pv))
    if 1 <= r <= max_int and abs(pv - r) < 1e-6:
        return r
    return None


def _int_pow(x, n):
    """x**n for a small positive integer n via exponentiation by squaring.
    Pure VPU multiplies — no EUP (log/exp) work."""
    result = None
    base = x
    m = n
    while m:
        if m & 1:
            result = base if result is None else result * base
        m >>= 1
        if m:
            base = base * base
    return result


def _pow_p(xc, p_scalar, int_p):
    if int_p is not None:
        return _int_pow(xc, int_p)
    # General path: one log + one exp per element (EUP).
    # TODO(synk): optional bf16 EUP variant for v6e/v7x (~2x EUP rate, ~0.4%
    # rel. err.) intentionally not used to keep f32-exact semantics on v5e.
    return jnp.exp(p_scalar * jnp.log(xc))


# --------------------------------------------------------------------------- #
# Kernels
# --------------------------------------------------------------------------- #
def _gem_kernel_single(s_ref, x_ref, o_ref, *, int_p):
    # Single reduction step: the whole (H*W) extent is in this tile.
    # s_ref: SMEM f32[4] = [p, 1/p, eps, 1/HW]  (p pre-clamped >= 0.1)
    p = s_ref[0]
    inv_p = s_ref[1]
    eps = s_ref[2]
    inv_hw = s_ref[3]

    x = x_ref[...].astype(jnp.float32)           # upcast on-chip
    xc = jnp.clip(x, eps, 10000.0)               # clamp(min=eps, max=1e4)
    xp = _pow_p(xc, p, int_p)                    # x ** p
    mean = jnp.sum(xp, axis=-1, keepdims=True) * inv_hw
    # mean ** (1/p): negligible EUP work on a (tile_nc, 1) vector.
    # abs() from the reference is redundant (mean >= eps**p > 0).
    o_ref[...] = jnp.exp(inv_p * jnp.log(mean)).astype(o_ref.dtype)


def _gem_kernel_multi(s_ref, x_ref, o_ref, acc_ref, *, int_p, hw, tile_hw, need_mask):
    # Multi-step reduction over the HW grid axis (tile_hw = 128 * 2**m).
    k = pl.program_id(1)

    @pl.when(k == 0)
    def _init():
        acc_ref[...] = jnp.zeros_like(acc_ref)

    p = s_ref[0]
    eps = s_ref[2]

    x = x_ref[...].astype(jnp.float32)
    xc = jnp.clip(x, eps, 10000.0)
    xp = _pow_p(xc, p, int_p)

    if need_mask:
        # Ragged tail: zero out lanes past the true HW extent so padded block
        # data (arbitrary VMEM contents after clip/pow) never biases the sum.
        lane = lax.broadcasted_iota(jnp.int32, xp.shape, 1)
        valid = (k * tile_hw + lane) < hw
        xp = jnp.where(valid, xp, 0.0)

    # Pairwise lane-halving fold down to 128 lanes. All slices are 128-aligned
    # static slices (whole-vreg selections), so this is pure VPU adds; the one
    # cross-lane (XLU) reduce happens only in the finalize below.
    w = tile_hw
    red = xp
    while w > 128:
        w //= 2
        red = red[:, :w] + red[:, w:]
    acc_ref[...] += red

    @pl.when(k == pl.num_programs(1) - 1)
    def _finalize():
        inv_p = s_ref[1]
        inv_hw = s_ref[3]
        mean = jnp.sum(acc_ref[...], axis=-1, keepdims=True) * inv_hw
        o_ref[...] = jnp.exp(inv_p * jnp.log(mean)).astype(o_ref.dtype)


# --------------------------------------------------------------------------- #
# Tiling
# --------------------------------------------------------------------------- #
def _choose_tiles(nc, hw, itemsize, target_bytes):
    """Pick (tile_nc, tile_hw).

    tile_hw is either the full HW extent (single reduction step) or 128 * 2**m
    (multi-step; ragged tail lane-masked in-kernel).  tile_nc is a multiple of
    8 or the full row extent, and is capped so that N*C >= 9 always yields at
    least two row tiles (keeps both v7x TensorCores busy on the parallel axis).
    """
    if nc > 8:
        row_cap = min(nc, _round_up(_round_up(nc, 2) // 2, 8))
    else:
        row_cap = nc  # full-extent block (legal even if < 8)

    # Full-spatial tile if at least an 8-row slab fits the per-buffer budget.
    full_rows = (target_bytes // (hw * itemsize)) // 8 * 8
    if full_rows >= 8:
        tile_hw = hw
        tile_nc = min(row_cap, full_rows)
        if tile_nc >= nc:
            tile_nc = nc
        return tile_nc, tile_hw

    # Split the spatial axis: rows first, then the largest 128 * 2**m lanes
    # that keep one buffer within budget (works for any HW, 128-divisible or
    # not — the last block is masked in-kernel).
    tile_nc = row_cap
    if tile_nc >= nc:
        tile_nc = nc
    lane_budget = max(target_bytes // (max(tile_nc, 8) * itemsize), 128)
    tile_hw = 128
    while tile_hw * 2 <= lane_budget:
        tile_hw *= 2
    return tile_nc, tile_hw


# --------------------------------------------------------------------------- #
# Wrapper
# --------------------------------------------------------------------------- #
def gem_pallas(x, p, eps=1e-06, *, target_bytes=6 << 20):
    """x: (N, C, H, W), p: (1,) learnable scalar. Returns (N, C, 1, 1)."""
    N, C, H, W = x.shape
    NC, HW = N * C, H * W
    x2d = x.reshape(NC, HW)  # native dtype on the wire

    # Static fast path for integer p (GeM default p=3): VPU-only powers.
    int_p = _static_int_p(p)

    # Hoisted scalar glue: clamp(p, min=0.1), 1/p, eps, 1/HW -> SMEM.
    p_c = jnp.clip(jnp.asarray(p, jnp.float32).reshape(-1)[0], 0.1, None)
    scalars = jnp.stack(
        [p_c, 1.0 / p_c, jnp.float32(eps), jnp.float32(1.0 / HW)]
    )

    itemsize = jnp.dtype(x.dtype).itemsize
    tile_nc, tile_hw = _choose_tiles(NC, HW, itemsize, target_bytes)
    grid_nc = pl.cdiv(NC, tile_nc)

    if tile_hw == HW:
        # Single reduction step: no accumulator, no init/finalize gating.
        out = pl.pallas_call(
            functools.partial(_gem_kernel_single, int_p=int_p),
            out_shape=jax.ShapeDtypeStruct((NC, 1), x.dtype),
            grid=(grid_nc,),
            in_specs=[
                pl.BlockSpec(memory_space=pltpu.SMEM),                 # scalars
                pl.BlockSpec((tile_nc, HW), lambda i: (i, 0)),         # input
            ],
            out_specs=pl.BlockSpec((tile_nc, 1), lambda i: (i, 0)),
            compiler_params=pltpu.CompilerParams(
                dimension_semantics=("parallel",),
                vmem_limit_bytes=32 << 20,
            ),
        )(scalars, x2d)
    else:
        grid_hw = pl.cdiv(HW, tile_hw)
        need_mask = (HW % tile_hw) != 0
        out = pl.pallas_call(
            functools.partial(
                _gem_kernel_multi,
                int_p=int_p,
                hw=HW,
                tile_hw=tile_hw,
                need_mask=need_mask,
            ),
            out_shape=jax.ShapeDtypeStruct((NC, 1), x.dtype),
            grid=(grid_nc, grid_hw),
            in_specs=[
                pl.BlockSpec(memory_space=pltpu.SMEM),                 # scalars
                pl.BlockSpec((tile_nc, tile_hw), lambda i, k: (i, k)),  # input
            ],
            out_specs=pl.BlockSpec((tile_nc, 1), lambda i, k: (i, 0)),
            scratch_shapes=[pltpu.VMEM((tile_nc, 128), jnp.float32)],
            compiler_params=pltpu.CompilerParams(
                dimension_semantics=("parallel", "arbitrary"),
                vmem_limit_bytes=32 << 20,
            ),
        )(scalars, x2d)

    return out.reshape(N, C, 1, 1)


def gem_reference(x, p, eps=1e-06):
    """Plain-JAX reference mirroring the PyTorch gem() for verification."""
    p_eff = jnp.clip(jnp.asarray(p, jnp.float32).reshape(-1)[0], 0.1, None)
    xc = jnp.clip(x.astype(jnp.float32), eps, 10000.0)
    pooled = jnp.mean(xc ** p_eff, axis=(-2, -1), keepdims=True)
    return jnp.abs(pooled ** (1.0 / p_eff)).astype(x.dtype)


# --------------------------------------------------------------------------- #
# Self-test
# --------------------------------------------------------------------------- #
if __name__ == "__main__":
    key = jax.random.PRNGKey(0)
    N, C, H, W = 2, 4, 16, 16
    x = jax.random.normal(key, (N, C, H, W), dtype=jnp.float32)

    # Deterministic parameter init: GeM.__init__ sets p = ones(1) * 3
    p_param = jnp.ones((1,), dtype=jnp.float32) * 3.0

    # Main case: integer-p fast path, single-reduction-step kernel.
    y = jax.block_until_ready(gem_pallas(x, p_param, eps=1e-06))
    y_ref = gem_reference(x, p_param, eps=1e-06)
    assert y.shape == (N, C, 1, 1), y.shape
    assert jnp.allclose(y, y_ref, rtol=1e-4, atol=1e-6), (
        f"max abs diff {jnp.max(jnp.abs(y - y_ref))}"
    )

    # Exercise the tiled, lane-masked reduction path (HW split at 128*2**m
    # with a ragged tail) by shrinking the per-buffer byte budget.
    x2 = jax.random.normal(jax.random.PRNGKey(1), (2, 4, 20, 20), dtype=jnp.float32)
    y2 = jax.block_until_ready(gem_pallas(x2, p_param, eps=1e-06, target_bytes=8 * 1024))
    y2_ref = gem_reference(x2, p_param, eps=1e-06)
    assert jnp.allclose(y2, y2_ref, rtol=1e-4, atol=1e-6), (
        f"max abs diff {jnp.max(jnp.abs(y2 - y2_ref))}"
    )

    # Exercise the general (non-integer p) exp/log path.
    p_frac = jnp.ones((1,), dtype=jnp.float32) * 2.5
    y3 = jax.block_until_ready(gem_pallas(x, p_frac, eps=1e-06))
    y3_ref = gem_reference(x, p_frac, eps=1e-06)
    assert jnp.allclose(y3, y3_ref, rtol=1e-4, atol=1e-6), (
        f"max abs diff {jnp.max(jnp.abs(y3 - y3_ref))}"
    )

    print("KERNEL_OK")
</pallas_src>

<mosaic_0001>
module attributes {stable_mosaic.version = 11 : i64} {
  func.func @_gem_kernel_single(%arg0: i32, %arg1: memref<4xf32, #tpu.memory_space<smem>>, %arg2: memref<8x256xf32, #tpu.memory_space<vmem>>, %arg3: memref<8x1xf32, #tpu.memory_space<vmem>>) attributes {dimension_semantics = [#tpu.dimension_semantics<parallel>], iteration_bounds = array<i64: 1>, scalar_prefetch = 0 : i64, scratch_operands = 0 : i64, tpu.core_type = #tpu.core_type<tc>, window_params = [{transform_indices = @transform_0, window_bounds = array<i64: 4>}, {transform_indices = @transform_1, window_bounds = array<i64: 8, 256>}, {transform_indices = @transform_2, window_bounds = array<i64: 8, 1>}]} {
    %c1 = arith.constant 1 : index
    %0 = memref.load %arg1[%c1] : memref<4xf32, #tpu.memory_space<smem>>
    %c2 = arith.constant 2 : index
    %1 = memref.load %arg1[%c2] : memref<4xf32, #tpu.memory_space<smem>>
    %c3 = arith.constant 3 : index
    %2 = memref.load %arg1[%c3] : memref<4xf32, #tpu.memory_space<smem>>
    %c0 = arith.constant 0 : index
    %c0_0 = arith.constant 0 : index
    %3 = vector.load %arg2[%c0, %c0_0] : memref<8x256xf32, #tpu.memory_space<vmem>>, vector<8x256xf32>
    %cst = arith.constant 1.000000e+04 : f32
    %4 = vector.broadcast %1 : f32 to vector<8x256xf32>
    %5 = arith.maximumf %4, %3 : vector<8x256xf32>
    %6 = vector.broadcast %cst : f32 to vector<8x256xf32>
    %7 = arith.minimumf %6, %5 : vector<8x256xf32>
    %8 = arith.mulf %7, %7 : vector<8x256xf32>
    %9 = arith.mulf %7, %8 : vector<8x256xf32>
    %cst_1 = arith.constant dense<0.000000e+00> : vector<8xf32>
    %10 = vector.multi_reduction <add>, %9, %cst_1 [1] : vector<8x256xf32> to vector<8xf32>
    %11 = vector.shape_cast %10 : vector<8xf32> to vector<8x1xf32>
    %12 = vector.broadcast %2 : f32 to vector<8x1xf32>
    %13 = arith.mulf %11, %12 : vector<8x1xf32>
    %14 = math.log %13 : vector<8x1xf32>
    %15 = vector.broadcast %0 : f32 to vector<8x1xf32>
    %16 = arith.mulf %15, %14 : vector<8x1xf32>
    %17 = math.exp %16 : vector<8x1xf32>
    %c0_2 = arith.constant 0 : index
    %c0_3 = arith.constant 0 : index
    %18 = vector.load %arg3[%c0_2, %c0_3] : memref<8x1xf32, #tpu.memory_space<vmem>>, vector<8x1xf32>
    tpu.vector_store %arg3[%c0_2, %c0_3], %17 {strides = array<i32>} : memref<8x1xf32, #tpu.memory_space<vmem>>, vector<8x1xf32>,
    return
  }
  func.func @transform_0(%arg0: i32) -> i32 {
    %c0_i32 = arith.constant 0 : i32
    %c0_i32_0 = arith.constant 0 : i32
    return %c0_i32 : i32
  }
  func.func @transform_1(%arg0: i32) -> (i32, i32) {
    %c0_i32 = arith.constant 0 : i32
    %c0_i32_0 = arith.constant 0 : i32
    return %arg0, %c0_i32 : i32, i32
  }
  func.func @transform_2(%arg0: i32) -> (i32, i32) {
    %c0_i32 = arith.constant 0 : i32
    %c0_i32_0 = arith.constant 0 : i32
    return %arg0, %c0_i32 : i32, i32
  }
}

</mosaic_0001>

<bundles_post_ra>
// kernel: tpu_custom_call.1
= control target key start
LH: loop header
LB: loop body
LE: loop exit
PB: predicated region body
PF: predicated region fallthrough
CT: control target
= control target key end

     0   :  { %7 = vsyncpa [#allocation4], 0  ;;  %s134_s0 = inlined_call_operand.hbm [shape: f32[4], index: 0, kind: input, shape index: {}]   ;;  %s135_s1 = inlined_call_operand.hbm [shape: f32[8,256], index: 1, kind: input, shape index: {}]   ;;  %s136_s2 = inlined_call_operand.vmem [shape: f32[8,1], index: 2, kind: output, shape index: {}]  }
   0x1   :  { %8 = vsyncpa [#allocation3], 0  ;;  %s108_s9 = smov [#allocation2]   ;;  %s109_s12 = smov [#allocation5]  }
   0x2   :  { %16 = dma.hbm_to_smem %s134_s0, 16, %s108_s9, [#allocation4]  }
   0x3   :  { %s23_s13 = sshll.u32 %s109_s12, 4  ;;  %s24_s13 = int_to_ptr.vmem [resolvable:$true] %s23_s13 }
   0x4   :  { %s92_s14 = scalar_lea.vmem %s24_s13, 256  ;;  %p97_p1 = scmp.lt.s32.totalorder %s24_s13, %s24_s13 }
   0x5   :  { %p93_p0 = scmp.ne.s32.totalorder %s24_s13, %s92_s14  ;;  %p98_p2 = scmp.lt.s32.totalorder %s92_s14, %s92_s14 }
   0x7   :  { %p99_p3 = por %p98_p2, %p97_p1 }
   0x9   :  { %p100_p4 = pnand %p99_p3, %p93_p0 }
   0xb   :  { %103 = shalt.err (!%p100_p4)
}
   0xc   :  { %26 = dma.hbm_to_vmem [thread:$0]  %s135_s1, 256, %s24_s13, [#allocation3]  }
   0xd   :  { %104 = dma.done.wait [#allocation4], 16  }
   0xe   :  { %105 = vsyncadd [#allocation4], 4294967280 }
   0xf   :  { %106 = dma.done.wait [#allocation3], 256  }
  0x10   :  { %107 = vsyncadd [#allocation3], 4294967040 }
  0x11   :  { %33 = sfence }
  0x12   :  { %s68_s0 = sld [smem:[#allocation2 + $0x2]]  ;;  %v37_v0 = vld [vmem:[#allocation5] sm:$0xff]  ;;  %v38_v1 = vld [vmem:[#allocation5 + $0x8] sm:$0xff]  ;;  %vm59_vm0 = vcmask 7168  }
  0x13   :  { %s69_s1 = sld [smem:[#allocation2 + $0x3]] }
  0x14   :  { %s67_s17 = sld [smem:[#allocation2 + $0x1]] }
  0x18   :  { %v39_v2 = vstv %s68_s0 }
  0x19   :  { %v40_v3 = vmax.f32 %v39_v2, %v37_v0  ;;  %v41_v4 = vmax.f32 %v39_v2, %v38_v1  ;;  %v51_v12 = vstv %s69_s1 }
  0x1a   :  { %v55_v16 = vstv %s67_s17 }
  0x1b   :  { %v42_v5 = vmin.f32 %v40_v3, 10000.0  ;;  %v43_v6 = vmin.f32 %v41_v4, 10000.0 }
  0x1d   :  { %v44_v7 = vmul.f32 %v42_v5, %v42_v5  ;;  %v45_v8 = vmul.f32 %v43_v6, %v43_v6 }
  0x1f   :  { %v46_v9 = vmul.f32 %v44_v7, %v42_v5  ;;  %v47_v10 = vmul.f32 %v45_v8, %v43_v6 }
  0x21   :  { %v48_v11 = vadd.f32 %v47_v10, %v46_v9 }
  0x23   :  { %49 = vadd.xlane.f32.xlu0 %v48_v11 }
  0xac   :  { %v50_v13 = vpop.xlane.xlu0 %49 }
  0xad   :  { %v52_v14 = vmul.f32 %v51_v12, %v50_v13 }
  0xaf   :  { %72 = vlog2.f32 %v52_v14 }
  0xbc   :  { %v73_v15 = vpop.eup %72 }
  0xbd   :  { %v54_v17 = vmul.f32 0.6931472, %v73_v15 }
  0xbf   :  { %v56_v18 = vmul.f32 %v55_v16, %v54_v17 }
  0xc1   :  { %v57_v19 = vmul.f32 1.442695, %v56_v18 }
  0xc3   :  { %74 = vpow2.f32 %v57_v19 }
  0xd0   :  { %v75_v20 = vpop.eup %74 }
  0xd1   :  { %60 = vst.msk [vmem:[%s136_s2] sm:$0xff] %vm59_vm0, %v75_v20 }
  0xd2   :  { %65 = vsyncpa [#allocation3], 1 }
  0xd3   :  { %66 = vsyncpa [#allocation4], 1 }

</bundles_post_ra>
